<compile_context>
chip_gen: v6e
topology: v6e:2x2x1
jax: 0.10.0
libtpu: 0.0.40
codegen_flags: <defaults>
</compile_context>

<pallas_src>
import functools

import jax
import jax.numpy as jnp
from jax.experimental import pallas as pl
from jax.experimental.pallas import tpu as pltpu


def _round_up(x, m):
    return ((x + m - 1) // m) * m


def _tv_kernel(x_ref, out_ref, *, h, w):
    """One grid step: TV partial sum of a (TBC, H*W) block of flattened slices."""
    hw = h * w
    x = x_ref[...].astype(jnp.float32)                     # (TBC, HW)

    # Neighbour to the right (same image row) and below (next image row).
    # roll is per-row along the lane axis, so slices never mix; the wrap-around
    # elements are removed by the boundary masks below.
    x_right = pltpu.roll(x, shift=hw - 1, axis=1)          # x[..., (i+1) % HW]
    x_down = pltpu.roll(x, shift=hw - w, axis=1)           # x[..., (i+W) % HW]

    idx = jax.lax.broadcasted_iota(jnp.int32, (1, hw), 1)  # flattened spatial idx
    mask_h = (idx % w) != (w - 1)                          # not last column
    mask_v = idx < (h - 1) * w                             # not last row

    contrib = (jnp.where(mask_h, jnp.abs(x_right - x), 0.0)
               + jnp.where(mask_v, jnp.abs(x_down - x), 0.0))
    partial = jnp.sum(contrib)                             # one reduce per block

    # Lane-dense (1, 128) write; wrapper reads lane 0 of each block.
    out_ref[...] = jnp.broadcast_to(partial.astype(jnp.float32), (1, 128))


def total_variation_loss(x, *, target_tile_bytes=4 * 1024 * 1024):
    """x: (B, C, H, W). Returns scalar TV loss matching the PyTorch module."""
    b, c, h, w = x.shape
    bc = b * c
    hw = h * w

    # Lane-dense layout: each (H, W) slice becomes one row of length H*W.
    x2 = x.reshape(bc, hw)

    # Pick TBC (slices per block) so one input tile is ~target_tile_bytes,
    # multiple of 8 (sublane alignment), capped by the (padded) number of slices.
    itemsize = x.dtype.itemsize
    slice_bytes = hw * itemsize
    tbc = max(1, target_tile_bytes // slice_bytes)
    tbc = max(8, (tbc // 8) * 8)
    tbc = min(tbc, _round_up(bc, 8))

    # Pad with all-zero slices (they contribute exactly 0 to the TV sum).
    bc_padded = _round_up(bc, tbc)
    if bc_padded != bc:
        x2 = jnp.pad(x2, ((0, bc_padded - bc), (0, 0)))
    num_blocks = bc_padded // tbc

    partials = pl.pallas_call(
        functools.partial(_tv_kernel, h=h, w=w),
        out_shape=jax.ShapeDtypeStruct((num_blocks, 128), jnp.float32),
        grid_spec=pltpu.PrefetchScalarGridSpec(
            num_scalar_prefetch=0,
            grid=(num_blocks,),
            in_specs=[pl.BlockSpec((tbc, hw), lambda i: (i, 0))],
            out_specs=pl.BlockSpec((1, 128), lambda i: (i, 0)),
        ),
        compiler_params=pltpu.CompilerParams(
            # Independent per-block partials -> safe to shard across TCs (v7x).
            dimension_semantics=("parallel",),
            # ~4 MiB tiles double-buffered + f32 temporaries stays well inside
            # this even on v7x's 64 MiB VMEM.
            vmem_limit_bytes=48 * 1024 * 1024,
        ),
    )(x2)

    total = jnp.sum(partials[:, 0])
    return (total / (bc * hw)).astype(jnp.float32)


def _reference(x):
    x = x.astype(jnp.float32)
    b, c, h, w = x.shape
    tv = jnp.sum(jnp.abs(x[:, :, 1:, :] - x[:, :, :-1, :])) + \
         jnp.sum(jnp.abs(x[:, :, :, 1:] - x[:, :, :, :-1]))
    return tv / (b * c * h * w)


if __name__ == "__main__":
    key = jax.random.PRNGKey(0)
    x = jax.random.normal(key, (2, 4, 16, 16), dtype=jnp.float32)

    out = total_variation_loss(x)
    out = jax.block_until_ready(out)

    ref = _reference(x)
    assert jnp.allclose(out, ref, rtol=1e-5, atol=1e-5), (out, ref)
    print("KERNEL_OK")
</pallas_src>

<mosaic_0001>
module attributes {stable_mosaic.version = 11 : i64} {
  func.func @_tv_kernel(%arg0: i32, %arg1: memref<8x256xf32, #tpu.memory_space<vmem>>, %arg2: memref<1x128xf32, #tpu.memory_space<vmem>>) attributes {dimension_semantics = [#tpu.dimension_semantics<parallel>], iteration_bounds = array<i64: 1>, scalar_prefetch = 0 : i64, scratch_operands = 0 : i64, tpu.core_type = #tpu.core_type<tc>, window_params = [{transform_indices = @transform_0, window_bounds = array<i64: 8, 256>}, {transform_indices = @transform_1, window_bounds = array<i64: 1, 128>}]} {
    %c0 = arith.constant 0 : index
    %c0_0 = arith.constant 0 : index
    %0 = vector.load %arg1[%c0, %c0_0] : memref<8x256xf32, #tpu.memory_space<vmem>>, vector<8x256xf32>
    %c255_i32 = arith.constant 255 : i32
    %1 = tpu.dynamic_rotate %0 by %c255_i32 dim 1 : vector<8x256xf32>, i32 -> vector<8x256xf32>
    %c240_i32 = arith.constant 240 : i32
    %2 = tpu.dynamic_rotate %0 by %c240_i32 dim 1 : vector<8x256xf32>, i32 -> vector<8x256xf32>
    %3 = tpu.iota {dimensions = array<i32: 1>} : vector<1x256xi32>
    %c16_i32 = arith.constant 16 : i32
    %c0_i32 = arith.constant 0 : i32
    %4 = arith.cmpi eq, %c16_i32, %c0_i32 : i32
    %c1_i32 = arith.constant 1 : i32
    %5 = arith.select %4, %c1_i32, %c16_i32 : i32
    %6 = vector.broadcast %5 : i32 to vector<1x256xi32>
    %7 = arith.remsi %3, %6 : vector<1x256xi32>
    %c0_i32_1 = arith.constant 0 : i32
    %8 = vector.broadcast %c0_i32_1 : i32 to vector<1x256xi32>
    %9 = arith.cmpi ne, %7, %8 : vector<1x256xi32>
    %c0_i32_2 = arith.constant 0 : i32
    %10 = vector.broadcast %c0_i32_2 : i32 to vector<1x256xi32>
    %11 = arith.cmpi slt, %7, %10 : vector<1x256xi32>
    %c0_i32_3 = arith.constant 0 : i32
    %12 = arith.cmpi slt, %5, %c0_i32_3 : i32
    %13 = vector.broadcast %12 : i1 to vector<1x256xi1>
    %14 = vector.broadcast %13 : vector<1x256xi1> to vector<1x256xi1>
    %15 = arith.xori %11, %14 : vector<1x256xi1>
    %16 = arith.andi %15, %9 : vector<1x256xi1>
    %17 = vector.broadcast %5 : i32 to vector<1x256xi32>
    %18 = arith.addi %7, %17 : vector<1x256xi32>
    %19 = arith.select %16, %18, %7 : vector<1x256xi1>, vector<1x256xi32>
    %c15_i32 = arith.constant 15 : i32
    %20 = vector.broadcast %c15_i32 : i32 to vector<1x256xi32>
    %21 = arith.cmpi ne, %19, %20 : vector<1x256xi32>
    %c240_i32_4 = arith.constant 240 : i32
    %22 = vector.broadcast %c240_i32_4 : i32 to vector<1x256xi32>
    %23 = arith.cmpi slt, %3, %22 : vector<1x256xi32>
    %24 = arith.subf %1, %0 : vector<8x256xf32>
    %25 = math.absf %24 : vector<8x256xf32>
    %cst = arith.constant 0.000000e+00 : f32
    %26 = vector.shape_cast %21 : vector<1x256xi1> to vector<1x256xi1>
    %27 = vector.broadcast %26 : vector<1x256xi1> to vector<8x256xi1>
    %28 = vector.broadcast %cst : f32 to vector<8x256xf32>
    %29 = arith.select %27, %25, %28 : vector<8x256xi1>, vector<8x256xf32>
    %30 = arith.subf %2, %0 : vector<8x256xf32>
    %31 = math.absf %30 : vector<8x256xf32>
    %cst_5 = arith.constant 0.000000e+00 : f32
    %32 = vector.shape_cast %23 : vector<1x256xi1> to vector<1x256xi1>
    %33 = vector.broadcast %32 : vector<1x256xi1> to vector<8x256xi1>
    %34 = vector.broadcast %cst_5 : f32 to vector<8x256xf32>
    %35 = arith.select %33, %31, %34 : vector<8x256xi1>, vector<8x256xf32>
    %36 = arith.addf %29, %35 : vector<8x256xf32>
    %37 = vector.shape_cast %36 : vector<8x256xf32> to vector<1x8x256xf32>
    %cst_6 = arith.constant dense<0.000000e+00> : vector<1xf32>
    %38 = vector.multi_reduction <add>, %37, %cst_6 [1, 2] : vector<1x8x256xf32> to vector<1xf32>
    %39 = vector.shape_cast %38 : vector<1xf32> to vector<1x1x1xf32>
    %40 = vector.extract %39[0, 0, 0] : f32 from vector<1x1x1xf32>
    %41 = vector.broadcast %40 : f32 to vector<1x128xf32>
    %c0_7 = arith.constant 0 : index
    %c0_8 = arith.constant 0 : index
    %42 = vector.load %arg2[%c0_7, %c0_8] : memref<1x128xf32, #tpu.memory_space<vmem>>, vector<1x128xf32>
    tpu.vector_store %arg2[%c0_7, %c0_8], %41 {strides = array<i32>} : memref<1x128xf32, #tpu.memory_space<vmem>>, vector<1x128xf32>,
    return
  }
  func.func @transform_0(%arg0: i32) -> (i32, i32) {
    %c0_i32 = arith.constant 0 : i32
    %c0_i32_0 = arith.constant 0 : i32
    return %arg0, %c0_i32 : i32, i32
  }
  func.func @transform_1(%arg0: i32) -> (i32, i32) {
    %c0_i32 = arith.constant 0 : i32
    %c0_i32_0 = arith.constant 0 : i32
    return %arg0, %c0_i32 : i32, i32
  }
}

</mosaic_0001>

<bundles_post_ra>
// kernel: tpu_custom_call.1
= control target key start
LH: loop header
LB: loop body
LE: loop exit
PB: predicated region body
PF: predicated region fallthrough
CT: control target
= control target key end

     0   :  { %6 = vsyncpa [#allocation3], 0  ;;  %s187_s0 = inlined_call_operand.hbm [shape: f32[8,256], index: 0, kind: input, shape index: {}]   ;;  %s188_s1 = inlined_call_operand.hbm [shape: f32[1,128], index: 1, kind: output, shape index: {}]  }
   0x1   :  { %7 = vsyncpa [#allocation4], 0  ;;  %s167_s6 = smov [#allocation2]  }
   0x2   :  { %s14_s7 = sshll.u32 %s167_s6, 4  ;;  %s15_s7 = int_to_ptr.vmem [resolvable:$true] %s14_s7 }
   0x3   :  { %s131_s8 = scalar_lea.vmem %s15_s7, 256  ;;  %p136_p1 = scmp.lt.s32.totalorder %s15_s7, %s15_s7 }
   0x4   :  { %p132_p0 = scmp.ne.s32.totalorder %s15_s7, %s131_s8  ;;  %p137_p2 = scmp.lt.s32.totalorder %s131_s8, %s131_s8 }
   0x6   :  { %p138_p3 = por %p137_p2, %p136_p1 }
   0x8   :  { %p139_p4 = pnand %p138_p3, %p132_p0 }
   0xa   :  { %142 = shalt.err (!%p139_p4)
}
   0xb   :  { %17 = dma.hbm_to_vmem [thread:$0]  %s187_s0, 256, %s15_s7, [#allocation3]  }
   0xc   :  { %163 = dma.done.wait [#allocation3], 256  }
   0xd   :  { %164 = vsyncadd [#allocation3], 4294967040  ;;  %v21_v0 = vld [vmem:[#allocation2] sm:$0xff]  ;;  %s168_s11 = smov 112   ;;  %s169_s12 = smov 127   ;;  %v22_v1 = vld [vmem:[#allocation2 + $0x8] sm:$0xff]  ;;  %v27_v2 = vlaneseq }
   0xe   :  { %32 = vrot.lane.b32.xlu1 %v21_v0, %s168_s11  ;;  %23 = vrot.lane.b32.xlu0 %v21_v0, %s169_s12  ;;  %s170_s0 = smov [#allocation5]  }
   0xf   :  { %v28_v3 = vand.u32 127, %v27_v2  ;;  %s108_s13 = sshll.u32 %s170_s0, 4  ;;  %s109_s13 = int_to_ptr.vmem [resolvable:$true] %s108_s13 }
  0x10   :  { %s143_s15 = scalar_lea.vmem %s109_s13, 16  ;;  %s147_s16 = scalar_lea.vmem %s109_s13, 32 }
  0x11   :  { %v39_v4 = vadd.s32 128, %v28_v3  ;;  %vm36_vm0 = vcmp.lt.s32.totalorder %v28_v3, 112  ;;  %vm29_vm1 = vcmp.lt.s32.totalorder %v28_v3, 127  ;;  %v44_v7 = vand.u32 15, %v28_v3  ;;  %p144_p5 = scmp.ne.s32.totalorder %s109_s13, %s143_s15  ;;  %p148_p6 = scmp.lt.s32.totalorder %s109_s13, %s109_s13 }
  0x12   :  { %34 = vrot.lane.b32.xlu1 %v22_v1, %s168_s11  ;;  %25 = vrot.lane.b32.xlu0 %v22_v1, %s169_s12  ;;  %p149_p7 = scmp.lt.s32.totalorder %s147_s16, %s143_s15 }
  0x13   :  { %v51_v8 = vand.u32 15, %v39_v4  ;;  %vm64_vm2 = vcmp.ne.s32.totalorder %v44_v7, 15  ;;  %vm67_vm4 = vcmp.lt.s32.totalorder %v39_v4, 240 }
  0x14   :  { %p150_p8 = por %p149_p7, %p148_p6 }
  0x15   :  { %vm65_vm3 = vcmp.ne.s32.totalorder %v51_v8, 15 }
  0x16   :  { %p151_p9 = pnand %p150_p8, %p144_p5 }
  0x80   :  { %v33_v5 = vpop.permute.xlu1 %32  ;;  %v24_v6 = vpop.permute.xlu0 %23 }
  0x84   :  { %v35_v9 = vpop.permute.xlu1 %34  ;;  %v26_v10 = vpop.permute.xlu0 %25 }
  0x85   :  { %v37_v11 = vsel %vm36_vm0, %v33_v5, %v35_v9  ;;  %v38_v12 = vsel %vm36_vm0, %v35_v9, %v33_v5  ;;  %v30_v13 = vsel %vm29_vm1, %v24_v6, %v26_v10  ;;  %v31_v14 = vsel %vm29_vm1, %v26_v10, %v24_v6 }
  0x86   :  { %v78_v15 = vsub.f32 %v37_v11, %v21_v0  ;;  %v79_v16 = vsub.f32 %v38_v12, %v22_v1  ;;  %v68_v17 = vsub.f32 %v30_v13, %v21_v0  ;;  %v69_v18 = vsub.f32 %v31_v14, %v22_v1 }
  0x88   :  { %v80_v19 = vand.u32 2147483647, %v78_v15  ;;  %v81_v20 = vand.u32 2147483647, %v79_v16  ;;  %v70_v21 = vand.u32 2147483647, %v68_v17 }
  0x89   :  { %v71_v22 = vand.u32 2147483647, %v69_v18 }
  0x8a   :  { %v76_v23 = vsel %vm64_vm2, %v70_v21, 0.0  ;;  %v87_v24 = vsel %vm67_vm4, %v81_v20, 0.0 }
  0x8b   :  { %v77_v25 = vsel %vm65_vm3, %v71_v22, 0.0  ;;  %v88_v26 = vadd.f32 %v80_v19, %v76_v23 }
  0x8c   :  { %v89_v27 = vadd.f32 %v87_v24, %v77_v25 }
  0x8e   :  { %v90_v28 = vadd.f32 %v89_v27, %v88_v26 }
  0x90   :  { %91 = vadd.xlane.f32.xlu0 %v90_v28 }
 0x119   :  { %v92_v29 = vpop.xlane.xlu0 %91 }
 0x11a   :  { %v93_v30 = vrot.slane %v92_v29, 4 }
 0x11c   :  { %v94_v31 = vadd.f32 %v93_v30, %v92_v29 }
 0x11e   :  { %v95_v32 = vrot.slane %v94_v31, 2 }
 0x120   :  { %v96_v33 = vadd.f32 %v95_v32, %v94_v31 }
 0x122   :  { %v97_v34 = vrot.slane %v96_v33, 1 }
 0x124   :  { %v98_v35 = vadd.f32 %v97_v34, %v96_v33 }
 0x126   :  { %117 = vpush %v98_v35 }
 0x157   :  { %s118_s14 = spop %117 }
 0x158   :  { %v100_v36 = vstv %s118_s14 }
 0x159   :  { %101 = vst [vmem:[#allocation5] sm:$0x1] %v100_v36 }
 0x15a   :  { %154 = shalt.err (!%p151_p9)
}
 0x15b   :  { %111 = dma.vmem_to_hbm [thread:$0]  %s109_s13, 16, %s188_s1, [#allocation4]  }
 0x15c   :  { %165 = dma.done.wait [#allocation4], 16  }
 0x15d   :  { %166 = vsyncadd [#allocation4], 4294967280 }
 0x15e   :  { %115 = vsyncpa [#allocation3], 1 }
 0x15f   :  { %116 = vsyncpa [#allocation4], 1 }

</bundles_post_ra>
